<compile_context>
chip_gen: v7x
topology: tpu7x:2x2x1
jax: 0.10.0
libtpu: 0.0.40
codegen_flags: <defaults>
</compile_context>

<pallas_src>
import functools
import math

import jax
import jax.numpy as jnp
from jax.experimental import pallas as pl
from jax.experimental.pallas import tpu as pltpu


def layernorm_kernel(x_ref, alpha_ref, bias_ref, o_ref, *, eps, d):
    # x_ref: (tm, d) VMEM tile; alpha_ref/bias_ref: (1,) scalars in SMEM.
    x = x_ref[...].astype(jnp.float32)

    # Single fused pass over the lane axis: sum(x) and sum(x*x).
    s = jnp.sum(x, axis=-1, keepdims=True)
    sq = jnp.sum(x * x, axis=-1, keepdims=True)

    mean = s * (1.0 / d)
    # Unbiased variance (torch.Tensor.std default): (sum(x^2) - sum(x)*mean)/(d-1).
    var = (sq - s * mean) * (1.0 / (d - 1))
    var = jnp.maximum(var, 0.0)  # guard tiny negative values from fp cancellation
    std = jnp.sqrt(var)

    # Per-row scale instead of a per-element divide (exact divide: 1e-5 tolerance).
    scale = alpha_ref[0] / (std + eps)
    y = (x - mean) * scale + bias_ref[0]
    o_ref[...] = y.astype(o_ref.dtype)


def _derive_tm(m, d, itemsize, *, vmem_budget_bytes=16 << 20, max_tm=8192):
    """Pick the row tile: as large as the VMEM budget allows (in+out, double
    buffered = 4 copies), rounded to the sublane multiple, while keeping at
    least 2 grid blocks so the parallel axis can shard across TensorCores."""
    mult = 16 if itemsize < 4 else 8  # bf16 packs 16 rows per vreg
    tm = vmem_budget_bytes // (4 * d * itemsize)
    tm = max(mult, (tm // mult) * mult)
    tm = min(tm, max_tm)
    # Keep >= 2 grid blocks when there are enough rows (v7x megacore sharding).
    if m > mult:
        half = pl.cdiv(pl.cdiv(m, 2), mult) * mult
        tm = min(tm, max(mult, half))
    # Never larger than the (rounded-up) row count itself.
    tm = min(tm, pl.cdiv(m, mult) * mult)
    return tm


def layer_norm(x, alpha, bias, *, eps=1e-6):
    """x: (..., d) -> (..., d). alpha, bias: shape (1,) scalar params (PyTorch)."""
    *lead, d = x.shape
    if d < 2:
        # torch .std(ddof=1) on a single element is NaN anyway.
        raise ValueError("layer_norm requires last dim >= 2 (unbiased std).")
    m = math.prod(lead) if lead else 1
    x2d = x.reshape(m, d)

    itemsize = jnp.dtype(x.dtype).itemsize
    tm = _derive_tm(m, d, itemsize)
    grid_m = pl.cdiv(m, tm)  # ragged M handled by masked edge-block writes; no pad/copy

    # TODO(synk): if d is not a multiple of 128, stores on the lane axis become
    # masked vst.msk; pad the feature axis + mask in-kernel if that case matters.

    kernel = functools.partial(layernorm_kernel, eps=float(eps), d=d)

    cost = pl.CostEstimate(
        flops=7 * m * d,          # sum, sumsq, center, scale-mul, add, ...
        transcendentals=m,        # one sqrt per row
        bytes_accessed=2 * m * d * itemsize + 8,
    )

    out2d = pl.pallas_call(
        kernel,
        out_shape=jax.ShapeDtypeStruct((m, d), x.dtype),
        grid=(grid_m,),
        in_specs=[
            pl.BlockSpec((tm, d), lambda i: (i, 0)),
            pl.BlockSpec(memory_space=pltpu.MemorySpace.SMEM),
            pl.BlockSpec(memory_space=pltpu.MemorySpace.SMEM),
        ],
        out_specs=pl.BlockSpec((tm, d), lambda i: (i, 0)),
        compiler_params=pltpu.CompilerParams(
            dimension_semantics=("parallel",),
            vmem_limit_bytes=32 << 20,  # above v5e's 16 MiB scoped default, safe on v7x
        ),
        cost_estimate=cost,
    )(x2d, alpha, bias)

    return out2d.reshape(*lead, d)


def _reference(x, alpha, bias, eps):
    mean = x.mean(axis=-1, keepdims=True)
    std = x.std(axis=-1, keepdims=True, ddof=1)  # torch.Tensor.std default (unbiased)
    return alpha[0] * (x - mean) / (std + eps) + bias[0]


if __name__ == "__main__":
    key = jax.random.PRNGKey(0)
    kx1, kx2 = jax.random.split(key, 2)

    # Module initializes alpha=1, bias=0; use non-trivial values to exercise
    # the scale/shift path (deterministic).
    alpha = jnp.array([1.2345], jnp.float32)
    bias = jnp.array([-0.5], jnp.float32)
    eps = 1e-6

    # Case 1: (batch, seq, d_model) tokens, rows divide the tile evenly.
    B, S, D = 2, 8, 128
    x1 = jax.random.normal(kx1, (B, S, D), jnp.float32)
    out1 = jax.block_until_ready(layer_norm(x1, alpha, bias, eps=eps))
    ref1 = _reference(x1, alpha, bias, eps)
    assert out1.shape == (B, S, D)
    assert jnp.allclose(out1, ref1, atol=1e-5, rtol=1e-5), float(
        jnp.max(jnp.abs(out1 - ref1))
    )

    # Case 2: ragged row count (exercises the no-pad edge-block path).
    B2, S2 = 3, 5
    x2 = jax.random.normal(kx2, (B2, S2, D), jnp.float32)
    out2 = jax.block_until_ready(layer_norm(x2, alpha, bias, eps=eps))
    ref2 = _reference(x2, alpha, bias, eps)
    assert out2.shape == (B2, S2, D)
    assert jnp.allclose(out2, ref2, atol=1e-5, rtol=1e-5), float(
        jnp.max(jnp.abs(out2 - ref2))
    )

    print("KERNEL_OK")
</pallas_src>

<mosaic_0001>
module attributes {stable_mosaic.version = 11 : i64} {
  func.func @layernorm_kernel(%arg0: i32, %arg1: memref<8x128xf32, #tpu.memory_space<vmem>>, %arg2: memref<1xf32, #tpu.memory_space<smem>>, %arg3: memref<1xf32, #tpu.memory_space<smem>>, %arg4: memref<8x128xf32, #tpu.memory_space<vmem>>) attributes {dimension_semantics = [#tpu.dimension_semantics<parallel>], iteration_bounds = array<i64: 2>, scalar_prefetch = 0 : i64, scratch_operands = 0 : i64, tpu.core_type = #tpu.core_type<tc>, window_params = [{transform_indices = @transform_0, window_bounds = array<i64: 8, 128>}, {transform_indices = @transform_1, window_bounds = array<i64: 1>}, {transform_indices = @transform_2, window_bounds = array<i64: 1>}, {transform_indices = @transform_3, window_bounds = array<i64: 8, 128>}]} {
    %c0 = arith.constant 0 : index
    %c0_0 = arith.constant 0 : index
    %0 = vector.load %arg1[%c0, %c0_0] : memref<8x128xf32, #tpu.memory_space<vmem>>, vector<8x128xf32>
    %cst = arith.constant dense<0.000000e+00> : vector<8xf32>
    %1 = vector.multi_reduction <add>, %0, %cst [1] : vector<8x128xf32> to vector<8xf32>
    %2 = vector.shape_cast %1 : vector<8xf32> to vector<8x1xf32>
    %3 = arith.mulf %0, %0 : vector<8x128xf32>
    %cst_1 = arith.constant dense<0.000000e+00> : vector<8xf32>
    %4 = vector.multi_reduction <add>, %3, %cst_1 [1] : vector<8x128xf32> to vector<8xf32>
    %5 = vector.shape_cast %4 : vector<8xf32> to vector<8x1xf32>
    %cst_2 = arith.constant 7.812500e-03 : f32
    %6 = vector.broadcast %cst_2 : f32 to vector<8x1xf32>
    %7 = arith.mulf %2, %6 : vector<8x1xf32>
    %8 = arith.mulf %2, %7 : vector<8x1xf32>
    %9 = arith.subf %5, %8 : vector<8x1xf32>
    %cst_3 = arith.constant 0.00787401571 : f32
    %10 = vector.broadcast %cst_3 : f32 to vector<8x1xf32>
    %11 = arith.mulf %9, %10 : vector<8x1xf32>
    %cst_4 = arith.constant 0.000000e+00 : f32
    %12 = vector.broadcast %cst_4 : f32 to vector<8x1xf32>
    %13 = arith.maximumf %11, %12 : vector<8x1xf32>
    %14 = math.sqrt %13 : vector<8x1xf32>
    %c0_5 = arith.constant 0 : index
    %15 = memref.load %arg2[%c0_5] : memref<1xf32, #tpu.memory_space<smem>>
    %cst_6 = arith.constant 9.99999997E-7 : f32
    %16 = vector.broadcast %cst_6 : f32 to vector<8x1xf32>
    %17 = arith.addf %14, %16 : vector<8x1xf32>
    %18 = vector.broadcast %15 : f32 to vector<8x1xf32>
    %19 = arith.divf %18, %17 : vector<8x1xf32>
    %20 = vector.broadcast %7 : vector<8x1xf32> to vector<8x128xf32>
    %21 = arith.subf %0, %20 : vector<8x128xf32>
    %22 = vector.broadcast %19 : vector<8x1xf32> to vector<8x128xf32>
    %23 = arith.mulf %21, %22 : vector<8x128xf32>
    %c0_7 = arith.constant 0 : index
    %24 = memref.load %arg3[%c0_7] : memref<1xf32, #tpu.memory_space<smem>>
    %25 = vector.broadcast %24 : f32 to vector<8x128xf32>
    %26 = arith.addf %23, %25 : vector<8x128xf32>
    %c0_8 = arith.constant 0 : index
    %c0_9 = arith.constant 0 : index
    %27 = vector.load %arg4[%c0_8, %c0_9] : memref<8x128xf32, #tpu.memory_space<vmem>>, vector<8x128xf32>
    tpu.vector_store %arg4[%c0_8, %c0_9], %26 {strides = array<i32>} : memref<8x128xf32, #tpu.memory_space<vmem>>, vector<8x128xf32>,
    return
  }
  func.func @transform_0(%arg0: i32) -> (i32, i32) {
    %c0_i32 = arith.constant 0 : i32
    %c0_i32_0 = arith.constant 0 : i32
    return %arg0, %c0_i32 : i32, i32
  }
  func.func @transform_1(%arg0: i32) -> i32 {
    %c0_i32 = arith.constant 0 : i32
    %c0_i32_0 = arith.constant 0 : i32
    return %c0_i32 : i32
  }
  func.func @transform_2(%arg0: i32) -> i32 {
    %c0_i32 = arith.constant 0 : i32
    %c0_i32_0 = arith.constant 0 : i32
    return %c0_i32 : i32
  }
  func.func @transform_3(%arg0: i32) -> (i32, i32) {
    %c0_i32 = arith.constant 0 : i32
    %c0_i32_0 = arith.constant 0 : i32
    return %arg0, %c0_i32 : i32, i32
  }
}

</mosaic_0001>

<bundles_post_ra>
// kernel: tpu_custom_call.1
= control target key start
LH: loop header
LB: loop body
LE: loop exit
PB: predicated region body
PF: predicated region fallthrough
CT: control target
= control target key end

     0   :  { %s654_s0 = inlined_call_operand.hbm [shape: f32[16,128], index: 0, kind: input, shape index: {}]   ;;  %s655_s1 = inlined_call_operand.<no memory space> [shape: f32[1], index: 1, kind: input, shape index: {}]   ;;  %s656_s2 = inlined_call_operand.<no memory space> [shape: f32[1], index: 2, kind: input, shape index: {}]   ;;  %s657_s3 = inlined_call_operand.hbm [shape: f32[16,128], index: 3, kind: output, shape index: {}]  }
   0x1   :  { %8 = sst [smem:[#allocation2]] %s655_s1 }
   0x2   :  { %9 = sst [smem:[#allocation3]] %s656_s2 }
   0x3   :  { %10 = vsyncpa [#allocation5], 0 }
   0x4   :  { %12 = vsyncpa [#allocation5 + $0x1], 0 }
   0x5   :  { %13 = vsyncpa [#allocation6], 0 }
   0x6   :  { %15 = vsyncpa [#allocation6 + $0x1], 0  ;;  %s489_s16 = smov 0   ;;  %s491_s17 = smov 0  }
   0x7   :  { %s493_s18 = smov 0   ;;  %s495_s19 = smov 0  }
   0x8 LB: > { %s510_s1 = sadd.s32 4294967295, %s459_s19   ;;  %s301_s2 = sadd.s32 4294967294, %s459_s19   ;;  %s459_s19 = sphi %s495_s19, %s672_s19   ;;  %s455_s18 = sphi %s493_s18, %s671_s18   ;;  %s451_s17 = sphi %s491_s17, %s670_s17   ;;  %s447_s16 = sphi %s489_s16, %s669_s16  }
   0x9   : > { %s514_s20 = sadd.s32 1, %s459_s19   ;;  %s28_s21 = sadd.s32 1, %s455_s18 }
   0xa   : > { %s25_s22 = ssub.s32 %s459_s19, %s514_s20  ;;  %p35_p0 = scmp.ne.s32.totalorder %s455_s18, %s451_s17 }
   0xb   : > { %p26_p1 = scmp.eq.s32.totalorder %s25_s22, 0  ;;  %p36_p2 = scmp.eq.s32.totalorder %s459_s19, 0 }
   0xc   : > { %p41_p3 = scmp.ne.s32.totalorder %s451_s17, %s447_s16  ;;  %p42_p4 = scmp.eq.s32.totalorder %s510_s1, 0 }
   0xd   : > { %s526_s23 = scalar_select %p26_p1, %s455_s18, %s28_s21  }
   0xe   : > { %p528_p5 = por %p36_p2, %p35_p0  ;;  %p532_p6 = por %p42_p4, %p41_p3 }
   0xf   : > { %p107_p7 = scmp.eq.s32.totalorder %s510_s1, 1  ;;  %p113_p8 = scmp.eq.s32.totalorder %s301_s2, 1 }
  0x10   : > { %p325_p10 = scmp.lt.s32.totalorder %s459_s19, 2  ;;  %s139_s28 = sand.u32 1, %s455_s18  }
  0x11   : > { %p539_p11 = por %p107_p7, %p35_p0  ;;  %p543_p12 = por %p113_p8, %p41_p3 }
  0x12   : > { %s305_s29 = sshll.u32 %s459_s19, 7  ;;  %s304_s30 = sshll.u32 %s139_s28, 3 }
  0x13   : > { %s661_s26 = scalar_select %p539_p11, 1, 0 }
  0x14   : > { %s662_s27 = scalar_select %p543_p12, 1, 0 }
  0x15   : > { %s552_s6 = scalar_lea.hbm %s654_s0, %s305_s29  ;;  %s143_s7 = scalar_lea.vmem [#allocation4], %s304_s30 }
  0x16   : > { %s150_s8 = sshll.u32 %s143_s7, 4  ;;  %p556_p13 = pnand %p325_p10, %p528_p5  ;;  %s560_s8 = int_to_ptr.vmem [resolvable:$true] %s150_s8 }
  0x17   : > { %s140_s10 = scalar_lea.sflag [#allocation5], %s139_s28  ;;  %s363_s11 = scalar_lea.hbm %s552_s6, 128 }
  0x18   : > { %p364_p2 = scmp.ne.s32.totalorder %s552_s6, %s363_s11  ;;  %p365_p3 = pneg %p556_p13 }
  0x19   : > { %s368_s14 = scalar_lea.hbm %s654_s0, 256  ;;  %p369_p5 = scmp.lt.u32.totalorder %s552_s6, %s654_s0 }
  0x1a   : > { %p366_p4 = pnand %p365_p3, %p364_p2  ;;  %p370_p8 = scmp.lt.u32.totalorder %s368_s14, %s363_s11 }
  0x1b   : > { %p372_p9 = scmp.lt.u32.totalorder %s363_s11, %s552_s6 }
  0x1c   : > { %p367_p7 = pneg %p366_p4  ;;  %p371_p10 = por %p370_p8, %p369_p5 }
  0x1e   : > { %p373_p0 = por %p372_p9, %p371_p10 }
  0x20   : > { %p374_p1 = pnand %p373_p0, %p367_p7 }
  0x22   : > { %377 = shalt.err (!%p374_p1)
}
  0x23   : > { %s378_s21 = scalar_lea.vmem %s560_s8, 128  ;;  %s461_s22 = smov [#allocation4]  }
  0x24   : > { %p379_p2 = scmp.ne.s32.totalorder %s560_s8, %s378_s21  ;;  %s383_s24 = sshll.u32 %s461_s22, 4  ;;  %s384_s24 = int_to_ptr.vmem [resolvable:$false] %s383_s24 }
  0x25   : > { %s385_s28 = scalar_lea.vmem %s384_s24, 256  ;;  %p386_p11 = scmp.lt.s32.totalorder %s560_s8, %s384_s24 }
  0x26   : > { %p381_p4 = pnand %p379_p2, %p365_p3  ;;  %p387_p5 = scmp.lt.s32.totalorder %s385_s28, %s378_s21 }
  0x28   : > { %p382_p12 = pneg %p381_p4  ;;  %p388_p8 = por %p387_p5, %p386_p11 }
  0x2a   : > { %p389_p9 = pnand %p388_p8, %p382_p12 }
  0x2c   : > { %392 = shalt.err (!%p389_p9)
}
  0x2d   : > { %320 = dma.hbm_to_vmem [thread:$0]  (!%p556_p13), %s552_s6, 128, %s560_s8, %s140_s10  }
  0x2e   : > { %p664_p0 = scmp.lt.s32.totalorder %s459_s19, 3  ;;  %p665_p1 = scmp.ge.s32.totalorder %s459_s19, 1 }
  0x30   : > { %p156_p3 = pnand %p665_p1, %p664_p0 }
  0x31   : > { %s594_s29 = sand.u32 (!%p156_p3), 1, %s451_s17  }
  0x32   : > { %159 = sbr.rel (%p156_p3) target bundleno = 259 (0x103), region = 32  ;;  %s307_s30 = sshll.u32 (!%p156_p3), %s594_s29, 3 }
  0x33   : > { %s162_s4 = scalar_lea.sflag (!%p156_p3), [#allocation5], %s594_s29  ;;  %s165_s5 = scalar_lea.vmem (!%p156_p3), [#allocation4], %s307_s30 }
  0x39   : > { %438 = dma.done.wait (%p532_p6), %s162_s4, 128  }
  0x3a   : > { %440 = vsyncadd (%p532_p6), %s162_s4, 4294967168  ;;  %v188_v0 = vld [vmem:[%s165_s5] sm:$0xff]  ;;  %s206_s25 = sld [smem:[#allocation2]]  ;;  %s310_s7 = sshll.u32 %s510_s1, 7 }
  0x3b   : > { %189 = vadd.xlane.f32.xlu0 %v188_v0  ;;  %v191_v1 = vmul.f32 %v188_v0, %v188_v0  ;;  %s213_s6 = sld [smem:[#allocation3]]  ;;  %s187_s8 = scalar_lea.vmem [#allocation7], %s307_s30 }
  0x3c   : > { %s231_s9 = sshll.u32 %s187_s8, 4  ;;  %s610_s12 = scalar_lea.hbm %s657_s3, %s310_s7  ;;  %s612_s9 = int_to_ptr.vmem [resolvable:$true] %s231_s9 }
  0x3d   : > { %s218_s13 = scalar_lea.sflag [#allocation6], %s594_s29  ;;  %s393_s14 = scalar_lea.vmem %s612_s9, 128 }
  0x3e   : > { %p394_p6 = scmp.ne.s32.totalorder %s612_s9, %s393_s14  ;;  %p666_p11 = scmp.ne.s32.totalorder %s661_s26, 0 }
  0x3f   : > { %192 = vadd.xlane.f32.xlu0 %v191_v1  ;;  %s462_s1 = smov [#allocation7]  }
  0x40   : > { %v208_v15 = vstv %s206_s25  ;;  %p395_p12 = pnand %p394_p6, %p666_p11  ;;  %s397_s15 = sshll.u32 %s462_s1, 4  ;;  %s398_s15 = int_to_ptr.vmem [resolvable:$false] %s397_s15 }
  0x41   : > { %v214_v19 = vstv %s213_s6  ;;  %s399_s2 = scalar_lea.vmem %s398_s15, 256  ;;  %p400_p7 = scmp.lt.s32.totalorder %s612_s9, %s398_s15 }
  0x42   : > { %p396_p13 = pneg %p395_p12  ;;  %p401_p10 = scmp.lt.s32.totalorder %s399_s2, %s393_s14 }
  0x44   : > { %p402_p2 = por %p401_p10, %p400_p7 }
  0x46   : > { %p403_p4 = pnand %p402_p2, %p396_p13 }
  0xc8   : > { %v190_v2 = vpop.xlane.xlu0 %189 }
  0xc9   : > { %v194_v3 = vmul.f32 0.0078125, %v190_v2 }
  0xcb   : > { %v195_v4 = vmul.f32 %v194_v3, %v190_v2  ;;  %v211_v17 = vsub.f32 %v188_v0, %v194_v3 }
  0xcc   : > { %v193_v5 = vpop.xlane.xlu0 %192 }
  0xcd   : > { %v196_v6 = vsub.f32 %v193_v5, %v195_v4 }
  0xcf   : > { %v197_v7 = vmul.f32 0.007874016, %v196_v6 }
  0xd1   : > { %v198_v8 = vmax.f32 %v197_v7, 0.0 }
  0xd3   : > { %359 = vrsqrt.f32 %v198_v8  ;;  %vm201_vm0 = vcmp.eq.f32.partialorder %v198_v8, inf  ;;  %v204_v11 = vand.u32 2147483648, %v198_v8  ;;  %vm203_vm1 = vcmp.eq.f32.partialorder %v198_v8, 0.0 }
  0xdd   : > { %v360_v9 = vpop.eup %359 }
  0xde   : > { %v200_v10 = vmul.f32 %v360_v9, %v198_v8 }
  0xe0   : > { %v202_v12 = vsel %vm201_vm0, %v198_v8, %v200_v10 }
  0xe1   : > { %v205_v13 = vsel %vm203_vm1, %v204_v11, %v202_v12 }
  0xe2   : > { %v207_v14 = vadd.f32 1e-06, %v205_v13 }
  0xe4   : > { %361 = vrcp.f32 %v207_v14 }
  0xee   : > { %v362_v16 = vpop.eup %361 }
  0xef   : > { %v210_v18 = vmul.f32 %v362_v16, %v208_v15 }
  0xf1   : > { %v212_v20 = vmul.f32 %v211_v17, %v210_v18 }
  0xf3   : > { %v215_v21 = vadd.f32 %v214_v19, %v212_v20 }
  0xf5   : > { %216 = vst [vmem:[%s187_s8] sm:$0xff] %v215_v21 }
  0xf6   : > { %406 = shalt.err (!%p403_p4)
}
  0xf7   : > { %s407_s21 = scalar_lea.hbm %s610_s12, 128  ;;  %s411_s28 = scalar_lea.hbm %s657_s3, 256 }
  0xf8   : > { %p408_p5 = scmp.ne.s32.totalorder %s610_s12, %s407_s21  ;;  %p412_p0 = scmp.lt.u32.totalorder %s610_s12, %s657_s3 }
  0xf9   : > { %p413_p1 = scmp.lt.u32.totalorder %s411_s28, %s407_s21  ;;  %p415_p6 = scmp.lt.u32.totalorder %s407_s21, %s610_s12 }
  0xfa   : > { %p409_p8 = pnand %p408_p5, %p666_p11 }
  0xfb   : > { %p414_p3 = por %p413_p1, %p412_p0 }
  0xfc   : > { %p410_p9 = pneg %p409_p8 }
  0xfd   : > { %p416_p12 = por %p415_p6, %p414_p3 }
  0xff   : > { %p417_p13 = pnand %p416_p12, %p410_p9 }
 0x101   : > { %420 = shalt.err (!%p417_p13)
}
 0x102   : > { %315 = dma.vmem_to_hbm [thread:$0]  (%p666_p11), %s612_s9, 128, %s610_s12, %s218_s13  }
 0x103 PF: > { %s243_s4 = sand.u32 1, %s447_s16   ;;  %p667_p7 = scmp.ne.s32.totalorder %s662_s27, 0 }
 0x104   : > { %p668_p10 = scmp.ge.s32.totalorder %s459_s19, 2  ;;  %s244_s5 = scalar_lea.sflag [#allocation6], %s243_s4 }
 0x106   : > { %p322_p2 = pnand %p668_p10, %p667_p7 }
 0x108   : > { %442 = dma.done.wait (!%p322_p2), %s244_s5, 128  }
 0x109   : > { %444 = vsyncadd (!%p322_p2), %s244_s5, 4294967168  ;;  %p18_p4 = scmp.ge.s32.totalorder %s514_s20, 4   ;;  %s669_s16 = smov %s451_s17 }
 0x10a   : > { %s670_s17 = smov %s455_s18  ;;  %s671_s18 = smov %s526_s23 }
 0x10b   : > { %s672_s19 = smov %s514_s20  ;;  %20 = sbr.rel (!%p18_p4) target bundleno = 8 (0x8), region = 77 }
 0x112   :  { %249 = vsyncpa [#allocation5], 1 }
 0x113   :  { %251 = vsyncpa [#allocation5 + $0x1], 1 }
 0x114   :  { %252 = vsyncpa [#allocation6], 1 }
 0x115   :  { %254 = vsyncpa [#allocation6 + $0x1], 1 }

</bundles_post_ra>
